<compile_context>
chip_gen: v7x
topology: tpu7x:2x2x1
jax: 0.10.0
libtpu: 0.0.40
codegen_flags: <defaults>
</compile_context>

<pallas_src>
import jax
import jax.numpy as jnp
from jax.experimental import pallas as pl
from jax.experimental.pallas import tpu as pltpu


def _round_up(x, m):
    return (x + m - 1) // m * m


def _choose_tile_d(Dp, tile_d):
    """Largest multiple of 128 that divides Dp and is <= tile_d."""
    m = Dp // 128
    for t in range(max(1, min(tile_d // 128, m)), 0, -1):
        if m % t == 0:
            return 128 * t
    return 128


def _vmem_limit_bytes(buffer_bytes):
    """Size the scoped-VMEM request from actual buffer needs, capped per generation
    (~96 MiB on v5e/v6e 128 MiB parts, ~48 MiB on v7x 64 MiB-per-TC parts)."""
    cap = 64 * 1024 * 1024                       # conservative default
    try:
        cap = pltpu.get_tpu_info().vmem_capacity_bytes
    except Exception:
        pass
    want = int(buffer_bytes * 1.25) + (8 << 20)  # headroom for compiler-internal scratch
    return min(max(want, 32 << 20), int(cap * 3 // 4))


def _buffered_once(shape, index_map):
    """BlockSpec for operands DMA'd (at most) once per outer block: single-buffered."""
    try:
        return pl.BlockSpec(shape, index_map, pipeline_mode=pl.Buffered(1))
    except TypeError:  # older pallas without pipeline_mode: fall back to default buffering
        return pl.BlockSpec(shape, index_map)


def prepare_params(params):
    """One-time pad + cast of the weights (NOT per forward). Weights stored [in, out] -> bf16,
    output/lane dims zero-padded to multiples of 128; biases stay f32 [1, padded]."""
    wq, bq, wk, bk, wv, bv, wo, bo = params
    H, D = wq.shape
    Dp, Hp = _round_up(D, 128), _round_up(H, 128)

    def padw(w, r, c):
        w = w.astype(jnp.bfloat16)
        return jnp.pad(w, ((0, r - w.shape[0]), (0, c - w.shape[1])))

    def padb(b, c):
        b = b.astype(jnp.float32)
        return jnp.pad(b, ((0, 0), (0, c - b.shape[1])))

    return (padw(wq, H, Dp), padb(bq, Dp),
            padw(wk, H, Dp), padb(bk, Dp),
            padw(wv, H, Dp), padb(bv, Dp),
            padw(wo, Dp, Hp), padb(bo, Hp))


def multi_head_attention(q, k, v, prepared, *, tile_s=512, tile_d=512):
    """q, k, v: [S, H] float32. prepared = prepare_params(params). Returns [S, H] f32."""
    S, H = q.shape
    wq_p, bq_p, wk_p, bk_p, wv_p, bv_p, wo_p, bo_p = prepared
    Dp = wq_p.shape[1]
    Hp = wo_p.shape[1]

    tS = min(tile_s, _round_up(S, 8))        # sequence tile (sublane axis, multiple of 8)
    n_s = (S + tS - 1) // tS
    tD = _choose_tile_d(Dp, tile_d)          # K-feature block of the accumulator
    n_d = Dp // tD
    ragged = (n_s * tS != S)                 # last S tile contains out-of-bounds (garbage) rows

    bf16 = jnp.bfloat16
    lane_h = _round_up(H, 128)

    # ------------- Kernel 1: M[d-block] = (K[:, d-block]^T @ V) @ Wo, reduced over S tiles ----
    def kv_kernel(k_ref, v_ref, wk_ref, bk_ref, wv_ref, bv_ref, wo_ref, m_ref, acc_ref):
        i = pl.program_id(1)
        n_i = pl.num_programs(1)

        @pl.when(i == 0)
        def _init():
            acc_ref[...] = jnp.zeros_like(acc_ref)

        # In-kernel f32 -> bf16 cast (VPU work hidden under the MXU); inputs stream unpadded.
        k_t = k_ref[...].astype(bf16)
        v_t = v_ref[...].astype(bf16)
        K = jnp.dot(k_t, wk_ref[...], preferred_element_type=jnp.float32) + bk_ref[...]
        V = jnp.dot(v_t, wv_ref[...], preferred_element_type=jnp.float32) + bv_ref[...]
        # TODO(synk): when n_d == 1 the K and V projections could be fused into one
        # (tS,H)x(H,2*Dp) MXU call with a concatenated [Wk|Wv] resident (v6e drain overhead).

        def accumulate(K_x, V_x):
            acc_ref[...] += jax.lax.dot_general(
                K_x.astype(bf16), V_x.astype(bf16),
                dimension_numbers=(((0,), (0,)), ((), ())),
                preferred_element_type=jnp.float32)

        if ragged:
            # Only the last S tile holds rows past S; mask K and V there (and only there).
            @pl.when(i != n_i - 1)
            def _full():
                accumulate(K, V)

            @pl.when(i == n_i - 1)
            def _masked():
                rows = jax.lax.broadcasted_iota(jnp.int32, (tS, 1), 0) + i * tS
                valid = rows < S
                accumulate(jnp.where(valid, K, 0.0), jnp.where(valid, V, 0.0))
        else:
            accumulate(K, V)

        @pl.when(i == n_i - 1)
        def _finalize():
            # f32 finalize: do not re-round the accumulator to bf16 before the Dp contraction.
            m_ref[...] = jnp.dot(acc_ref[...], wo_ref[...].astype(jnp.float32),
                                 preferred_element_type=jnp.float32).astype(m_ref.dtype)

    k1_buf = (2 * 2 * tS * lane_h * 4              # k, v tiles (double-buffered f32)
              + _round_up(H, 16) * (tD + Dp) * 2   # Wk block + Wv (single-buffered bf16)
              + 8 * (tD + Dp) * 4                  # bk, bv
              + Dp * Hp * 2                        # Wo (single-buffered bf16)
              + tD * Dp * 4                        # acc scratch (f32)
              + 2 * tD * Hp * 2                    # M output blocks
              + Dp * Hp * 4)                       # f32 cast of Wo at finalize
    k1_flops = (2 * n_s * tS * H * Dp              # K projection (all d-blocks combined)
                + 2 * n_d * n_s * tS * H * Dp      # V projection (recomputed per d-block)
                + 2 * n_s * tS * Dp * Dp           # K^T V
                + 2 * Dp * Dp * Hp)                # finalize @ Wo
    k1_bytes = (n_d * 2 * S * H * 4                # k, v streamed once per d-block
                + 2 * H * Dp * 2 + Dp * Hp * 2     # Wk, Wv, Wo
                + (2 * Dp + Hp) * 4                # biases
                + Dp * Hp * 2)                     # M written

    m_arr = pl.pallas_call(
        kv_kernel,
        out_shape=jax.ShapeDtypeStruct((Dp, Hp), bf16),
        grid_spec=pltpu.PrefetchScalarGridSpec(
            num_scalar_prefetch=0,
            grid=(n_d, n_s),
            in_specs=[
                pl.BlockSpec((tS, H), lambda d, i: (i, 0)),        # k tile (streamed, f32)
                pl.BlockSpec((tS, H), lambda d, i: (i, 0)),        # v tile (streamed, f32)
                _buffered_once((H, tD), lambda d, i: (0, d)),      # Wk column block
                _buffered_once((1, tD), lambda d, i: (0, d)),      # bk block
                _buffered_once((H, Dp), lambda d, i: (0, 0)),      # Wv (resident)
                _buffered_once((1, Dp), lambda d, i: (0, 0)),      # bv
                _buffered_once((Dp, Hp), lambda d, i: (0, 0)),     # Wo (resident)
            ],
            out_specs=pl.BlockSpec((tD, Hp), lambda d, i: (d, 0)),
            scratch_shapes=[pltpu.VMEM((tD, Dp), jnp.float32)],
        ),
        compiler_params=pltpu.CompilerParams(
            dimension_semantics=("parallel", "arbitrary"),   # d-blocks independent; S reduced
            vmem_limit_bytes=_vmem_limit_bytes(k1_buf)),
        cost_estimate=pl.CostEstimate(flops=k1_flops, transcendentals=0,
                                      bytes_accessed=k1_bytes),
    )(k, v, wk_p, bk_p, wv_p, bv_p, wo_p)

    # ------------- Kernel 2: out_tile = (q_tile @ Wq + bq) @ M + bo ----------------------------
    def q_kernel(q_ref, wq_ref, bq_ref, m_ref, bo_ref, out_ref):
        Q = jnp.dot(q_ref[...].astype(bf16), wq_ref[...],
                    preferred_element_type=jnp.float32) + bq_ref[...]
        out = jnp.dot(Q.astype(bf16), m_ref[...],
                      preferred_element_type=jnp.float32) + bo_ref[...]
        out_ref[...] = out.astype(out_ref.dtype)

    k2_buf = (2 * tS * lane_h * 4                       # q tiles (double-buffered)
              + _round_up(H, 16) * Dp * 2 + 8 * Dp * 4  # Wq, bq (single-buffered)
              + Dp * Hp * 2 + 8 * Hp * 4                # M, bo (single-buffered)
              + 2 * tS * Hp * 4)                        # output tiles (double-buffered f32)
    k2_flops = 2 * n_s * tS * H * Dp + 2 * n_s * tS * Dp * Hp
    k2_bytes = S * H * 4 + H * Dp * 2 + Dp * Hp * 2 + (Dp + Hp) * 4 + S * Hp * 4

    out_p = pl.pallas_call(
        q_kernel,
        out_shape=jax.ShapeDtypeStruct((S, Hp), jnp.float32),
        grid_spec=pltpu.PrefetchScalarGridSpec(
            num_scalar_prefetch=0,
            grid=(n_s,),
            in_specs=[
                pl.BlockSpec((tS, H), lambda i: (i, 0)),           # q tile (streamed, f32)
                _buffered_once((H, Dp), lambda i: (0, 0)),         # Wq
                _buffered_once((1, Dp), lambda i: (0, 0)),         # bq
                _buffered_once((Dp, Hp), lambda i: (0, 0)),        # M
                _buffered_once((1, Hp), lambda i: (0, 0)),         # bo
            ],
            out_specs=pl.BlockSpec((tS, Hp), lambda i: (i, 0)),    # lane-dense output tiles
        ),
        compiler_params=pltpu.CompilerParams(
            dimension_semantics=("parallel",),                     # independent q tiles
            vmem_limit_bytes=_vmem_limit_bytes(k2_buf)),
        cost_estimate=pl.CostEstimate(flops=k2_flops, transcendentals=0,
                                      bytes_accessed=k2_bytes),
    )(q, wq_p, bq_p, m_arr, bo_p)

    return out_p[:, :H]


def init_params(key, hidden_size, num_heads):
    """Deterministic parameter init. Weights stored as [in, out] (pre-transposed nn.Linear),
    biases as [1, out]."""
    D = num_heads * hidden_size
    ks = jax.random.split(key, 8)
    s_in = 1.0 / jnp.sqrt(hidden_size)
    s_d = 1.0 / jnp.sqrt(D)
    wq = jax.random.normal(ks[0], (hidden_size, D), jnp.float32) * s_in
    bq = jax.random.normal(ks[1], (1, D), jnp.float32) * 0.01
    wk = jax.random.normal(ks[2], (hidden_size, D), jnp.float32) * s_in
    bk = jax.random.normal(ks[3], (1, D), jnp.float32) * 0.01
    wv = jax.random.normal(ks[4], (hidden_size, D), jnp.float32) * s_in
    bv = jax.random.normal(ks[5], (1, D), jnp.float32) * 0.01
    wo = jax.random.normal(ks[6], (D, hidden_size), jnp.float32) * s_d
    bo = jax.random.normal(ks[7], (1, hidden_size), jnp.float32) * 0.01
    return (wq, bq, wk, bk, wv, bv, wo, bo)


def reference(q, k, v, params):
    wq, bq, wk, bk, wv, bv, wo, bo = params
    Q = q @ wq + bq
    K = k @ wk + bk
    V = v @ wv + bv
    X = K.T @ V
    X = Q @ X
    return X @ wo + bo


if __name__ == "__main__":
    hidden_size = 32
    num_heads = 4
    seq = 8

    key = jax.random.PRNGKey(0)
    kq, kk, kv_, kp = jax.random.split(key, 4)
    q = jax.random.normal(kq, (seq, hidden_size), jnp.float32)
    k = jax.random.normal(kk, (seq, hidden_size), jnp.float32)
    v = jax.random.normal(kv_, (seq, hidden_size), jnp.float32)
    params = init_params(kp, hidden_size, num_heads)

    prepared = prepare_params(params)          # one-time weight pad/cast (hoisted out of forward)
    out = multi_head_attention(q, k, v, prepared)
    out = jax.block_until_ready(out)

    # Reference in f32 on the same bf16-rounded operands the kernel consumes.
    r16 = lambda x: x.astype(jnp.bfloat16).astype(jnp.float32)
    wq, bq, wk, bk, wv, bv, wo, bo = params
    ref = reference(r16(q), r16(k), r16(v),
                    (r16(wq), bq, r16(wk), bk, r16(wv), bv, r16(wo), bo))

    assert out.shape == q.shape, (out.shape, q.shape)
    rel_err = jnp.linalg.norm(out - ref) / jnp.linalg.norm(ref)
    assert float(rel_err) < 2e-2, float(rel_err)
    print("KERNEL_OK")
</pallas_src>

<mosaic_0001>
module attributes {stable_mosaic.version = 11 : i64} {
  func.func @kv_kernel(%arg0: i32, %arg1: i32, %arg2: memref<8x32xf32, #tpu.memory_space<vmem>>, %arg3: memref<8x32xf32, #tpu.memory_space<vmem>>, %arg4: memref<32x128xbf16, #tpu.memory_space<vmem>>, %arg5: memref<1x128xf32, #tpu.memory_space<vmem>>, %arg6: memref<32x128xbf16, #tpu.memory_space<vmem>>, %arg7: memref<1x128xf32, #tpu.memory_space<vmem>>, %arg8: memref<128x128xbf16, #tpu.memory_space<vmem>>, %arg9: memref<128x128xbf16, #tpu.memory_space<vmem>>, %arg10: memref<128x128xf32, #tpu.memory_space<vmem>>) attributes {dimension_semantics = [#tpu.dimension_semantics<parallel>, #tpu.dimension_semantics<arbitrary>], iteration_bounds = array<i64: 1, 1>, scalar_prefetch = 0 : i64, scratch_operands = 1 : i64, tpu.core_type = #tpu.core_type<tc>, window_params = [{transform_indices = @transform_0, window_bounds = array<i64: 8, 32>}, {transform_indices = @transform_1, window_bounds = array<i64: 8, 32>}, {pipeline_mode = #tpu.pipeline_mode<synchronous>, transform_indices = @transform_2, window_bounds = array<i64: 32, 128>}, {pipeline_mode = #tpu.pipeline_mode<synchronous>, transform_indices = @transform_3, window_bounds = array<i64: 1, 128>}, {pipeline_mode = #tpu.pipeline_mode<synchronous>, transform_indices = @transform_4, window_bounds = array<i64: 32, 128>}, {pipeline_mode = #tpu.pipeline_mode<synchronous>, transform_indices = @transform_5, window_bounds = array<i64: 1, 128>}, {pipeline_mode = #tpu.pipeline_mode<synchronous>, transform_indices = @transform_6, window_bounds = array<i64: 128, 128>}, {transform_indices = @transform_7, window_bounds = array<i64: 128, 128>}]} {
    %c0_i32 = arith.constant 0 : i32
    %0 = arith.cmpi eq, %arg1, %c0_i32 : i32
    %1 = arith.extui %0 : i1 to i32
    %c0_i32_0 = arith.constant 0 : i32
    %2 = arith.cmpi ne, %1, %c0_i32_0 : i32
    scf.if %2 {
      %cst_20 = arith.constant 0.000000e+00 : f32
      %26 = vector.broadcast %cst_20 : f32 to vector<128x128xf32>
      %c0_21 = arith.constant 0 : index
      %c0_22 = arith.constant 0 : index
      %27 = vector.load %arg10[%c0_21, %c0_22] : memref<128x128xf32, #tpu.memory_space<vmem>>, vector<128x128xf32>
      tpu.vector_store %arg10[%c0_21, %c0_22], %26 {strides = array<i32>} : memref<128x128xf32, #tpu.memory_space<vmem>>, vector<128x128xf32>,
    } else {
    }
    %c0 = arith.constant 0 : index
    %c0_1 = arith.constant 0 : index
    %3 = vector.load %arg2[%c0, %c0_1] : memref<8x32xf32, #tpu.memory_space<vmem>>, vector<8x32xf32>
    %4 = arith.truncf %3 : vector<8x32xf32> to vector<8x32xbf16>
    %c0_2 = arith.constant 0 : index
    %c0_3 = arith.constant 0 : index
    %5 = vector.load %arg3[%c0_2, %c0_3] : memref<8x32xf32, #tpu.memory_space<vmem>>, vector<8x32xf32>
    %6 = arith.truncf %5 : vector<8x32xf32> to vector<8x32xbf16>
    %c0_4 = arith.constant 0 : index
    %c0_5 = arith.constant 0 : index
    %7 = vector.load %arg4[%c0_4, %c0_5] : memref<32x128xbf16, #tpu.memory_space<vmem>>, vector<32x128xbf16>
    %cst = arith.constant dense<0.000000e+00> : vector<8x128xf32>
    %8 = tpu.matmul %4, %7, %cst {dimension_numbers = #tpu.dot_dimension_numbers<[1], [0], [0], [1], [0, 0, 1, 1], [], []>} : vector<8x32xbf16>, vector<32x128xbf16>, vector<8x128xf32> -> vector<8x128xf32>
    %c0_6 = arith.constant 0 : index
    %c0_7 = arith.constant 0 : index
    %9 = vector.load %arg5[%c0_6, %c0_7] : memref<1x128xf32, #tpu.memory_space<vmem>>, vector<1x128xf32>
    %10 = vector.broadcast %9 : vector<1x128xf32> to vector<8x128xf32>
    %11 = arith.addf %8, %10 : vector<8x128xf32>
    %c0_8 = arith.constant 0 : index
    %c0_9 = arith.constant 0 : index
    %12 = vector.load %arg6[%c0_8, %c0_9] : memref<32x128xbf16, #tpu.memory_space<vmem>>, vector<32x128xbf16>
    %cst_10 = arith.constant dense<0.000000e+00> : vector<8x128xf32>
    %13 = tpu.matmul %6, %12, %cst_10 {dimension_numbers = #tpu.dot_dimension_numbers<[1], [0], [0], [1], [0, 0, 1, 1], [], []>} : vector<8x32xbf16>, vector<32x128xbf16>, vector<8x128xf32> -> vector<8x128xf32>
    %c0_11 = arith.constant 0 : index
    %c0_12 = arith.constant 0 : index
    %14 = vector.load %arg7[%c0_11, %c0_12] : memref<1x128xf32, #tpu.memory_space<vmem>>, vector<1x128xf32>
    %15 = vector.broadcast %14 : vector<1x128xf32> to vector<8x128xf32>
    %16 = arith.addf %13, %15 : vector<8x128xf32>
    %c0_13 = arith.constant 0 : index
    %c0_14 = arith.constant 0 : index
    %17 = vector.load %arg10[%c0_13, %c0_14] : memref<128x128xf32, #tpu.memory_space<vmem>>, vector<128x128xf32>
    %18 = arith.truncf %11 : vector<8x128xf32> to vector<8x128xbf16>
    %19 = arith.truncf %16 : vector<8x128xf32> to vector<8x128xbf16>
    %cst_15 = arith.constant dense<0.000000e+00> : vector<128x128xf32>
    %20 = tpu.matmul %18, %19, %cst_15 {dimension_numbers = #tpu.dot_dimension_numbers<[0], [0], [1], [1], [0, 1, 1, 1], [], []>} : vector<8x128xbf16>, vector<8x128xbf16>, vector<128x128xf32> -> vector<128x128xf32>
    %21 = arith.addf %17, %20 : vector<128x128xf32>
    %c0_16 = arith.constant 0 : index
    %c0_17 = arith.constant 0 : index
    %22 = vector.load %arg10[%c0_16, %c0_17] : memref<128x128xf32, #tpu.memory_space<vmem>>, vector<128x128xf32>
    tpu.vector_store %arg10[%c0_16, %c0_17], %21 {strides = array<i32>} : memref<128x128xf32, #tpu.memory_space<vmem>>, vector<128x128xf32>,
    %c0_i32_18 = arith.constant 0 : i32
    %23 = arith.cmpi eq, %arg1, %c0_i32_18 : i32
    %24 = arith.extui %23 : i1 to i32
    %c0_i32_19 = arith.constant 0 : i32
    %25 = arith.cmpi ne, %24, %c0_i32_19 : i32
    scf.if %25 {
      %c0_20 = arith.constant 0 : index
      %c0_21 = arith.constant 0 : index
      %26 = vector.load %arg10[%c0_20, %c0_21] : memref<128x128xf32, #tpu.memory_space<vmem>>, vector<128x128xf32>
      %c0_22 = arith.constant 0 : index
      %c0_23 = arith.constant 0 : index
      %27 = vector.load %arg8[%c0_22, %c0_23] : memref<128x128xbf16, #tpu.memory_space<vmem>>, vector<128x128xbf16>
      %28 = arith.extf %27 : vector<128x128xbf16> to vector<128x128xf32>
      %cst_24 = arith.constant dense<0.000000e+00> : vector<128x128xf32>
      %29 = tpu.matmul %26, %28, %cst_24 {dimension_numbers = #tpu.dot_dimension_numbers<[1], [0], [0], [1], [0, 0, 1, 1], [], []>} : vector<128x128xf32>, vector<128x128xf32>, vector<128x128xf32> -> vector<128x128xf32>
      %30 = arith.truncf %29 : vector<128x128xf32> to vector<128x128xbf16>
      %c0_25 = arith.constant 0 : index
      %c0_26 = arith.constant 0 : index
      %31 = vector.load %arg9[%c0_25, %c0_26] : memref<128x128xbf16, #tpu.memory_space<vmem>>, vector<128x128xbf16>
      tpu.vector_store %arg9[%c0_25, %c0_26], %30 {strides = array<i32>} : memref<128x128xbf16, #tpu.memory_space<vmem>>, vector<128x128xbf16>,
    } else {
    }
    return
  }
  func.func @transform_0(%arg0: i32, %arg1: i32) -> (i32, i32) {
    %c0_i32 = arith.constant 0 : i32
    %c0_i32_0 = arith.constant 0 : i32
    return %arg1, %c0_i32 : i32, i32
  }
  func.func @transform_1(%arg0: i32, %arg1: i32) -> (i32, i32) {
    %c0_i32 = arith.constant 0 : i32
    %c0_i32_0 = arith.constant 0 : i32
    return %arg1, %c0_i32 : i32, i32
  }
  func.func @transform_2(%arg0: i32, %arg1: i32) -> (i32, i32) {
    %c0_i32 = arith.constant 0 : i32
    %c0_i32_0 = arith.constant 0 : i32
    return %c0_i32, %arg0 : i32, i32
  }
  func.func @transform_3(%arg0: i32, %arg1: i32) -> (i32, i32) {
    %c0_i32 = arith.constant 0 : i32
    %c0_i32_0 = arith.constant 0 : i32
    return %c0_i32, %arg0 : i32, i32
  }
  func.func @transform_4(%arg0: i32, %arg1: i32) -> (i32, i32) {
    %c0_i32 = arith.constant 0 : i32
    %c0_i32_0 = arith.constant 0 : i32
    %c0_i32_1 = arith.constant 0 : i32
    return %c0_i32, %c0_i32_0 : i32, i32
  }
  func.func @transform_5(%arg0: i32, %arg1: i32) -> (i32, i32) {
    %c0_i32 = arith.constant 0 : i32
    %c0_i32_0 = arith.constant 0 : i32
    %c0_i32_1 = arith.constant 0 : i32
    return %c0_i32, %c0_i32_0 : i32, i32
  }
  func.func @transform_6(%arg0: i32, %arg1: i32) -> (i32, i32) {
    %c0_i32 = arith.constant 0 : i32
    %c0_i32_0 = arith.constant 0 : i32
    %c0_i32_1 = arith.constant 0 : i32
    return %c0_i32, %c0_i32_0 : i32, i32
  }
  func.func @transform_7(%arg0: i32, %arg1: i32) -> (i32, i32) {
    %c0_i32 = arith.constant 0 : i32
    %c0_i32_0 = arith.constant 0 : i32
    return %arg0, %c0_i32 : i32, i32
  }
}

</mosaic_0001>

<bundles_post_ra>
// kernel: tpu_custom_call.1
= control target key start
LH: loop header
LB: loop body
LE: loop exit
PB: predicated region body
PF: predicated region fallthrough
CT: control target
= control target key end

     0   :  { %12 = vsyncpa [#allocation4], 0  ;;  %s1359_s0 = inlined_call_operand.hbm [shape: f32[8,32], index: 0, kind: input, shape index: {}]   ;;  %s1360_s1 = inlined_call_operand.hbm [shape: f32[8,32], index: 1, kind: input, shape index: {}]   ;;  %s1361_s2 = inlined_call_operand.hbm [shape: bf16[32,128], index: 2, kind: input, shape index: {}]   ;;  %s1362_s3 = inlined_call_operand.vmem [shape: f32[1,128], index: 3, kind: input, shape index: {}]   ;;  %s1363_s4 = inlined_call_operand.hbm [shape: bf16[32,128], index: 4, kind: input, shape index: {}]   ;;  %s1364_s5 = inlined_call_operand.vmem [shape: f32[1,128], index: 5, kind: input, shape index: {}]   ;;  %s1365_s6 = inlined_call_operand.hbm [shape: bf16[128,128], index: 6, kind: input, shape index: {}]   ;;  %s1366_s7 = inlined_call_operand.hbm [shape: bf16[128,128], index: 7, kind: output, shape index: {}]  }
   0x1   :  { %13 = vsyncpa [#allocation7], 0 }
   0x2   :  { %14 = vsyncpa [#allocation10], 0 }
   0x3   :  { %15 = vsyncpa [#allocation5], 0  ;;  %s1211_s24 = smov [#allocation6]   ;;  %s1071_s28 = scalar_lea.hbm %s1360_s1, 128 }
   0x4   :  { %s32_s25 = sshll.u32 %s1211_s24, 4  ;;  %p1072_p0 = scmp.ne.s32.totalorder %s1360_s1, %s1071_s28  ;;  %s33_s25 = int_to_ptr.vmem [resolvable:$true] %s32_s25 }
   0x5   :  { %p1075_p1 = scmp.lt.u32.totalorder %s1071_s28, %s1360_s1 }
   0x7   :  { %p1077_p2 = pnand %p1075_p1, %p1072_p0 }
   0x9   :  { %1080 = shalt.err (!%p1077_p2)
}
   0xa   :  { %s1081_s10 = scalar_lea.vmem %s33_s25, 128  ;;  %p1086_p4 = scmp.lt.s32.totalorder %s33_s25, %s33_s25 }
   0xb   :  { %p1082_p3 = scmp.ne.s32.totalorder %s33_s25, %s1081_s10  ;;  %p1087_p5 = scmp.lt.s32.totalorder %s1081_s10, %s1081_s10 }
   0xd   :  { %p1088_p6 = por %p1087_p5, %p1086_p4 }
   0xf   :  { %p1089_p7 = pnand %p1088_p6, %p1082_p3 }
  0x11   :  { %1092 = shalt.err (!%p1089_p7)
}
  0x12   :  { %35 = dma.hbm_to_vmem [thread:$0]  %s1360_s1, 128, %s33_s25, [#allocation7]  }
  0x13   :  { %s1212_s13 = smov [#allocation9]   ;;  %s1213_s15 = smov [#allocation3]  }
  0x14   :  { %s55_s14 = sshll.u32 %s1212_s13, 4  ;;  %s22_s16 = sshll.u32 %s1213_s15, 4  ;;  %s56_s14 = int_to_ptr.vmem [resolvable:$true] %s55_s14  ;;  %s23_s16 = int_to_ptr.vmem [resolvable:$true] %s22_s16 }
  0x15   :  { %s1093_s19 = scalar_lea.hbm %s1363_s4, 256 }
  0x16   :  { %p1094_p8 = scmp.ne.s32.totalorder %s1363_s4, %s1093_s19  ;;  %p1097_p9 = scmp.lt.u32.totalorder %s1093_s19, %s1363_s4 }
  0x18   :  { %p1099_p10 = pnand %p1097_p9, %p1094_p8 }
  0x1a   :  { %1102 = shalt.err (!%p1099_p10)
}
  0x1b   :  { %s1103_s1 = scalar_lea.vmem %s56_s14, 256  ;;  %p1108_p12 = scmp.lt.s32.totalorder %s56_s14, %s56_s14 }
  0x1c   :  { %p1104_p11 = scmp.ne.s32.totalorder %s56_s14, %s1103_s1  ;;  %p1109_p13 = scmp.lt.s32.totalorder %s1103_s1, %s1103_s1 }
  0x1e   :  { %p1110_p0 = por %p1109_p13, %p1108_p12 }
  0x20   :  { %p1111_p1 = pnand %p1110_p0, %p1104_p11 }
  0x22   :  { %1114 = shalt.err (!%p1111_p1)
}
  0x23   :  { %s1214_s24 = smov 64   ;;  %s1215_s25 = smov 4  }
  0x24   :  { %61 = dma.hbm_to_vmem [thread:$0]  %s1363_s4, 256, %s56_s14, [#allocation10], %s1214_s24, %s1214_s24, %s1215_s25  }
  0x25   :  { %s1115_s30 = scalar_lea.hbm %s1359_s0, 128 }
  0x26   :  { %p1116_p2 = scmp.ne.s32.totalorder %s1359_s0, %s1115_s30  ;;  %p1119_p3 = scmp.lt.u32.totalorder %s1115_s30, %s1359_s0 }
  0x28   :  { %p1121_p4 = pnand %p1119_p3, %p1116_p2 }
  0x2a   :  { %1124 = shalt.err (!%p1121_p4)
}
  0x2b   :  { %s1125_s12 = scalar_lea.vmem %s23_s16, 128  ;;  %p1130_p6 = scmp.lt.s32.totalorder %s23_s16, %s23_s16 }
  0x2c   :  { %p1126_p5 = scmp.ne.s32.totalorder %s23_s16, %s1125_s12  ;;  %p1131_p7 = scmp.lt.s32.totalorder %s1125_s12, %s1125_s12 }
  0x2e   :  { %p1132_p8 = por %p1131_p7, %p1130_p6 }
  0x30   :  { %p1133_p9 = pnand %p1132_p8, %p1126_p5 }
  0x32   :  { %1136 = shalt.err (!%p1133_p9)
}
  0x33   :  { %25 = dma.hbm_to_vmem [thread:$0]  %s1359_s0, 128, %s23_s16, [#allocation4]  }
  0x34   :  { %s1216_s14 = smov [#allocation8]   ;;  %s1217_s17 = smov [#allocation11]  }
  0x35   :  { %s41_s15 = sshll.u32 %s1216_s14, 4  ;;  %s69_s18 = sshll.u32 %s1217_s17, 4  ;;  %s42_s15 = int_to_ptr.vmem [resolvable:$true] %s41_s15  ;;  %s70_s18 = int_to_ptr.vmem [resolvable:$true] %s69_s18 }
  0x36   :  { %s1137_s21 = scalar_lea.hbm %s1361_s2, 256 }
  0x37   :  { %p1138_p10 = scmp.ne.s32.totalorder %s1361_s2, %s1137_s21  ;;  %p1141_p11 = scmp.lt.u32.totalorder %s1137_s21, %s1361_s2 }
  0x39   :  { %p1143_p12 = pnand %p1141_p11, %p1138_p10 }
  0x3b   :  { %1146 = shalt.err (!%p1143_p12)
}
  0x3c   :  { %s1147_s0 = scalar_lea.vmem %s42_s15, 256  ;;  %p1152_p0 = scmp.lt.s32.totalorder %s42_s15, %s42_s15 }
  0x3d   :  { %p1148_p13 = scmp.ne.s32.totalorder %s42_s15, %s1147_s0  ;;  %p1153_p1 = scmp.lt.s32.totalorder %s1147_s0, %s1147_s0 }
  0x3f   :  { %p1154_p2 = por %p1153_p1, %p1152_p0 }
  0x41   :  { %p1155_p3 = pnand %p1154_p2, %p1148_p13 }
  0x43   :  { %1158 = shalt.err (!%p1155_p3)
}
  0x44   :  { %47 = dma.hbm_to_vmem [thread:$0]  %s1361_s2, 256, %s42_s15, [#allocation7], %s1214_s24, %s1214_s24, %s1215_s25  }
  0x45   :  { %s1159_s30 = scalar_lea.hbm %s1365_s6, 1024 }
  0x46   :  { %p1160_p4 = scmp.ne.s32.totalorder %s1365_s6, %s1159_s30  ;;  %p1163_p5 = scmp.lt.u32.totalorder %s1159_s30, %s1365_s6 }
  0x48   :  { %p1165_p6 = pnand %p1163_p5, %p1160_p4 }
  0x4a   :  { %1168 = shalt.err (!%p1165_p6)
}
  0x4b   :  { %s1169_s12 = scalar_lea.vmem %s70_s18, 1024  ;;  %p1174_p8 = scmp.lt.s32.totalorder %s70_s18, %s70_s18 }
  0x4c   :  { %p1170_p7 = scmp.ne.s32.totalorder %s70_s18, %s1169_s12  ;;  %p1175_p9 = scmp.lt.s32.totalorder %s1169_s12, %s1169_s12 }
  0x4e   :  { %p1176_p10 = por %p1175_p9, %p1174_p8 }
  0x50   :  { %p1177_p11 = pnand %p1176_p10, %p1170_p7 }
  0x52   :  { %1180 = shalt.err (!%p1177_p11)
}
  0x53   :  { %75 = dma.hbm_to_vmem [thread:$0]  %s1365_s6, 1024, %s70_s18, [#allocation10], %s1214_s24, %s1214_s24, %s1215_s25  }
  0x54   :  { %1203 = dma.done.wait [#allocation4], 128  }
  0x55   :  { %1204 = vsyncadd [#allocation4], 4294967168 }
  0x56   :  { %1205 = dma.done.wait [#allocation7], 384  }
  0x57   :  { %1206 = vsyncadd [#allocation7], 4294966912 }
  0x58   :  { %1207 = dma.done.wait [#allocation10], 1280  }
  0x59   :  { %1208 = vsyncadd [#allocation10], 4294966016  ;;  %v1218_v0 = vmov 0.0   ;;  %vm1219_vm0 = vmmov 0   ;;  %v1067_v1 = vld [vmem:[#allocation8] sm:$0xff]   ;;  %v1068_v2 = vld [vmem:[#allocation8 + $0x8] sm:$0xff]  }
  0x5a   :  { %917 = vmatprep.subr.bf16.mxu0 %v1218_v0  ;;  %921 = vmatprep.mubr.msk.bf16.mxu0 %vm1219_vm0, %v1218_v0  ;;  %v112_v3 = vld [vmem:[#allocation3] sm:$0xff]  ;;  %v1070_v6 = vld [vmem:[#allocation9 + $0x8] sm:$0xff]   ;;  %vm139_vm1 = vcmask 261120   ;;  %vm308_vm2 = vcmask 1043456   ;;  %v785_v24 = vld [vmem:[#allocation11] sm:$0xff]   ;;  %vm283_vm3 = vcmask 64512  }
  0x5b   :  { %925 = vmatprep.subr.bf16.mxu1 %v1218_v0  ;;  %929 = vmatprep.mubr.msk.bf16.mxu1 %vm1219_vm0, %v1218_v0  ;;  %v1069_v4 = vld [vmem:[#allocation9] sm:$0xff]   ;;  %v113_v5 = vpack.c.bf16 %v112_v3, %v112_v3  ;;  %v114_v7 = vld [vmem:[#allocation6] sm:$0xff]  ;;  %v856_v25 = vld [vmem:[#allocation11 + $0x8] sm:$0xff]  }
  0x5c   :  { %918 = vmatpush3.bf16.msra.mxu0 %v1067_v1  ;;  %926 = vmatpush3.bf16.msra.mxu1 %v1069_v4  ;;  %v115_v8 = vpack.c.bf16 %v114_v7, %v114_v7  ;;  %v736_v9 = vld [vmem:[%s1362_s3] ss:$0 sm:$0xff]  ;;  %v858_v27 = vld [vmem:[#allocation11 + $0x18] sm:$0xff]   ;;  %v859_v28 = vld [vmem:[#allocation11 + $0x20] sm:$0xff]   ;;  %s1220_s3 = smov [#allocation12]  }
  0x5d   :  { %919 = vmatprep.subr.bf16.mxu0 %v1218_v0  ;;  %927 = vmatprep.subr.bf16.mxu1 %v1218_v0  ;;  %v740_v13 = vld [vmem:[%s1364_s5] ss:$0 sm:$0xff]  ;;  %v860_v29 = vld [vmem:[#allocation11 + $0x28] sm:$0xff]   ;;  %v862_v39 = vld [vmem:[#allocation11 + $0x38] sm:$0xff]   ;;  %s722_s5 = sshll.u32 %s1220_s3, 4  ;;  %s723_s5 = int_to_ptr.vmem [resolvable:$true] %s722_s5 }
  0x5e   :  { %v857_v26 = vld [vmem:[#allocation11 + $0x10] sm:$0xff]   ;;  %s1181_s17 = scalar_lea.vmem %s723_s5, 1024  ;;  %p1186_p13 = scmp.lt.s32.totalorder %s723_s5, %s723_s5 }
  0x5f   :  { %v861_v30 = vld [vmem:[#allocation11 + $0x30] sm:$0xff]   ;;  %p1182_p12 = scmp.ne.s32.totalorder %s723_s5, %s1181_s17  ;;  %p1187_p0 = scmp.lt.s32.totalorder %s1181_s17, %s1181_s17 }
  0x60   :  { %920 = vmatpush3.bf16.msra.mxu0 %v1068_v2  ;;  %928 = vmatpush3.bf16.msra.mxu1 %v1070_v6 }
  0x61   :  { %1039 = vmatprep.subr.bf16.mxu1 %v785_v24  ;;  %p1188_p1 = por %p1187_p0, %p1186_p13 }
  0x63   :  { %922 = vmatmul.mubr.msk.bf16.vlgmr.msra.gmra.mrb[0].mxu0 %vm139_vm1, %v113_v5  ;;  %930 = vmatmul.mubr.msk.bf16.vlgmr.msra.gmra.mrb[0].mxu1 %vm139_vm1, %v115_v8  ;;  %p1189_p2 = pnand %p1188_p1, %p1182_p12 }
  0x64   :  { %1047 = vmatpush3.bf16.msra.mxu1 %v785_v24 }
  0x65   :  { %1040 = vmatprep.subr.bf16.mxu1 %v856_v25 }
  0x68   :  { %1048 = vmatpush3.bf16.msra.mxu1 %v856_v25 }
  0x69   :  { %1041 = vmatprep.subr.bf16.mxu1 %v857_v26 }
  0x6c   :  { %1049 = vmatpush3.bf16.msra.mxu1 %v857_v26 }
  0x6d   :  { %1042 = vmatprep.subr.bf16.mxu1 %v858_v27 }
  0x70   :  { %1050 = vmatpush3.bf16.msra.mxu1 %v858_v27 }
  0x71   :  { %1043 = vmatprep.subr.bf16.mxu1 %v859_v28 }
  0x74   :  { %1051 = vmatpush3.bf16.msra.mxu1 %v859_v28 }
  0x75   :  { %1044 = vmatprep.subr.bf16.mxu1 %v860_v29 }
  0x78   :  { %1052 = vmatpush3.bf16.msra.mxu1 %v860_v29 }
  0x79   :  { %1045 = vmatprep.subr.bf16.mxu1 %v861_v30 }
  0x7c   :  { %1053 = vmatpush3.bf16.msra.mxu1 %v861_v30 }
  0x7d   :  { %1046 = vmatprep.subr.bf16.mxu1 %v862_v39 }
  0x80   :  { %1054 = vmatpush3.bf16.msra.mxu1 %v862_v39 }
 0x136   :  { %v177_v10 = vpop.f32.mrb[0].mxu0  ;;  %v243_v17 = vpop.f32.mrb[0].mxu1 }
 0x137   :  { %v923_v11 = vpop.f32.mrb[1].mxu0  ;;  %v178_v12 = vadd.f32 %v736_v9, %v177_v10  ;;  %v244_v18 = vadd.f32 %v740_v13, %v243_v17  ;;  %v931_v19 = vpop.f32.mrb[1].mxu1 }
 0x138   :  { %v180_v14 = vpop.f32.mrb[2].mxu0  ;;  %v246_v20 = vpop.f32.mrb[2].mxu1 }
 0x139   :  { %v924_v15 = vpop.f32.mrb[3].mxu0  ;;  %v265_v16 = vpack.c.bf16 %v178_v12, %v178_v12  ;;  %v266_v21 = vpack.c.bf16 %v244_v18, %v244_v18  ;;  %v932_v22 = vpop.f32.mrb[3].mxu1 }
 0x13b   :  { %267 = vxpose.xlu0.c.b16.start.end [1/1] (short) %v265_v16, 128  ;;  %v310_v23 = vsel %vm308_vm2, %v266_v21, 0  ;;  %1055 = vmatprep.subr.msk.bf16.mxu0 %vm308_vm2, %v266_v21 }
 0x13c   :  { %934 = vmatpush3.bf16.msra.mxu0 %v310_v23 }
 0x13d   :  { %1008 = vmatprep.subr.bf16.mxu0 %v785_v24 }
 0x1a1   :  { %v275_v31 = vpop.trf.xlu0 }
 0x1a2   :  { %935 = vmatprep.mubr.msk.bf16.mxu0 %vm283_vm3, %v275_v31 }
 0x1a5   :  { %v276_v32 = vpop.trf.xlu0 }
 0x1a6   :  { %936 = vmatmul.mubr.msk.bf16.vlgmr.msra.gmra.mrb[4].mxu0 %vm283_vm3, %v276_v32 }
 0x1a7   :  { %1010 = vmatpush3.bf16.msra.mxu0 %v785_v24 }
 0x1a8   :  { %1012 = vmatprep.subr.bf16.mxu0 %v856_v25 }
 0x1a9   :  { %v277_v33 = vpop.trf.xlu0 }
 0x1aa   :  { %939 = vmatprep.mubr.msk.bf16.mxu0 %vm283_vm3, %v277_v33 }
 0x1ab   :  { %1014 = vmatpush3.bf16.msra.mxu0 %v856_v25 }
 0x1ac   :  { %1016 = vmatprep.subr.bf16.mxu0 %v857_v26 }
 0x1ad   :  { %v278_v34 = vpop.trf.xlu0 }
 0x1ae   :  { %940 = vmatmul.mubr.msk.bf16.gmra.mrb[8].mxu0 %vm283_vm3, %v278_v34 }
 0x1af   :  { %1018 = vmatpush3.bf16.msra.mxu0 %v857_v26 }
 0x1b0   :  { %1020 = vmatprep.subr.bf16.mxu0 %v858_v27 }
 0x1b1   :  { %v279_v35 = vpop.trf.xlu0 }
 0x1b2   :  { %943 = vmatprep.mubr.msk.bf16.mxu0 %vm283_vm3, %v279_v35 }
 0x1b3   :  { %1022 = vmatpush3.bf16.msra.mxu0 %v858_v27 }
 0x1b4   :  { %1024 = vmatprep.subr.bf16.mxu0 %v859_v28 }
 0x1b5   :  { %v280_v36 = vpop.trf.xlu0 }
 0x1b6   :  { %944 = vmatmul.mubr.msk.bf16.gmra.mrb[12].mxu0 %vm283_vm3, %v280_v36 }
 0x1b7   :  { %1026 = vmatpush3.bf16.msra.mxu0 %v859_v28 }
 0x1b8   :  { %1028 = vmatprep.subr.bf16.mxu0 %v860_v29 }
 0x1b9   :  { %v281_v37 = vpop.trf.xlu0 }
 0x1ba   :  { %947 = vmatprep.mubr.msk.bf16.mxu0 %vm283_vm3, %v281_v37 }
 0x1bb   :  { %1030 = vmatpush3.bf16.msra.mxu0 %v860_v29 }
 0x1bc   :  { %1032 = vmatprep.subr.bf16.mxu0 %v861_v30 }
 0x1bd   :  { %v282_v38 = vpop.trf.xlu0 }
 0x1be   :  { %948 = vmatmul.mubr.msk.bf16.gmra.mrb[16].mxu0 %vm283_vm3, %v282_v38 }
 0x1bf   :  { %1034 = vmatpush3.bf16.msra.mxu0 %v861_v30 }
 0x1c0   :  { %1036 = vmatprep.subr.bf16.mxu0 %v862_v39 }
 0x1c3   :  { %1038 = vmatpush3.bf16.msra.mxu0 %v862_v39 }
 0x279   :  { %v937_v40 = vpop.f32.mrb[4].mxu0 }
 0x27a   :  { %v346_v41 = vpop.f32.mrb[5].mxu0 }
 0x27b   :  { %v938_v42 = vpop.f32.mrb[6].mxu0  ;;  %983 = vmatprep.mubr.f32.mxu0 %v346_v41 }
 0x27c   :  { %v349_v43 = vpop.f32.mrb[7].mxu0 }
 0x27d   :  { %984 = vmatmul.mubr.f32.vlgmr.msra.gmra.mrb[20].mxu0 %v349_v43 }
 0x27e   :  { %986 = vmatprep.mubr.f32.mxu0 %v937_v40 }
 0x281   :  { %v941_v44 = vpop.f32.mrb[8].mxu0  ;;  %987 = vmatmul.mubr.f32.gmra.mrb[22].mxu0 %v938_v42 }
 0x282   :  { %v362_v45 = vpop.f32.mrb[9].mxu0  ;;  %992 = vmatprep.mubr.f32.mxu1 %v941_v44 }
 0x283   :  { %v942_v46 = vpop.f32.mrb[10].mxu0  ;;  %989 = vmatprep.mubr.f32.mxu0 %v362_v45 }
 0x284   :  { %v365_v47 = vpop.f32.mrb[11].mxu0  ;;  %993 = vmatmul.mubr.f32.vlgmr.msra.gmra.mrb[4].mxu1 %v942_v46 }
 0x285   :  { %990 = vmatmul.mubr.f32.gmra.mrb[24].mxu0 %v365_v47 }
 0x289   :  { %v945_v48 = vpop.f32.mrb[12].mxu0 }
 0x28a   :  { %v378_v49 = vpop.f32.mrb[13].mxu0 }
 0x28b   :  { %v946_v50 = vpop.f32.mrb[14].mxu0  ;;  %995 = vmatprep.mubr.f32.mxu1 %v378_v49 }
 0x28c   :  { %v381_v51 = vpop.f32.mrb[15].mxu0 }
 0x28d   :  { %996 = vmatmul.mubr.f32.gmra.mrb[6].mxu1 %v381_v51 }
 0x28e   :  { %998 = vmatprep.mubr.f32.mxu1 %v945_v48 }
 0x291   :  { %v949_v52 = vpop.f32.mrb[16].mxu0  ;;  %999 = vmatmul.mubr.f32.gmra.mrb[8].mxu1 %v946_v50 }
 0x292   :  { %v394_v53 = vpop.f32.mrb[17].mxu0 }
 0x293   :  { %v950_v54 = vpop.f32.mrb[18].mxu0  ;;  %1001 = vmatprep.mubr.f32.mxu1 %v394_v53 }
 0x294   :  { %v397_v55 = vpop.f32.mrb[19].mxu0 }
 0x295   :  { %1002 = vmatmul.mubr.f32.gmra.mrb[10].mxu1 %v397_v55 }
 0x296   :  { %1004 = vmatprep.mubr.f32.mxu1 %v949_v52 }
 0x299   :  { %1005 = vmatmul.mubr.f32.gmra.mrb[12].mxu1 %v950_v54 }
 0x350   :  { %v985_v56 = vpop.f32.mrb[20].mxu0 }
 0x351   :  { %v558_v57 = vpop.f32.mrb[21].mxu0 }
 0x352   :  { %v819_v58 = vpack.c.bf16 %v985_v56, %v558_v57 }
 0x354   :  { %820 = vst [vmem:[#allocation12] sm:$0xff] %v819_v58   ;;  %v988_v59 = vpop.f32.mrb[22].mxu0 }
 0x355   :  { %v568_v60 = vpop.f32.mrb[23].mxu0 }
 0x356   :  { %v824_v61 = vpack.c.bf16 %v988_v59, %v568_v60 }
 0x357   :  { %v994_v62 = vpop.f32.mrb[4].mxu1 }
 0x358   :  { %863 = vst [vmem:[#allocation12 + $0x8] sm:$0xff] %v824_v61   ;;  %v991_v63 = vpop.f32.mrb[24].mxu0  ;;  %v588_v0 = vpop.f32.mrb[5].mxu1 }
 0x359   :  { %v834_v1 = vpack.c.bf16 %v994_v62, %v588_v0  ;;  %v578_v2 = vpop.f32.mrb[25].mxu0 }
 0x35a   :  { %v829_v3 = vpack.c.bf16 %v991_v63, %v578_v2 }
 0x35b   :  { %865 = vst [vmem:[#allocation12 + $0x18] sm:$0xff] %v834_v1  }
 0x35c   :  { %864 = vst [vmem:[#allocation12 + $0x10] sm:$0xff] %v829_v3  }
 0x360   :  { %v997_v4 = vpop.f32.mrb[6].mxu1 }
 0x361   :  { %v598_v5 = vpop.f32.mrb[7].mxu1 }
 0x362   :  { %v839_v6 = vpack.c.bf16 %v997_v4, %v598_v5 }
 0x364   :  { %866 = vst [vmem:[#allocation12 + $0x20] sm:$0xff] %v839_v6   ;;  %v1000_v7 = vpop.f32.mrb[8].mxu1 }
 0x365   :  { %v608_v8 = vpop.f32.mrb[9].mxu1 }
 0x366   :  { %v844_v9 = vpack.c.bf16 %v1000_v7, %v608_v8 }
 0x368   :  { %867 = vst [vmem:[#allocation12 + $0x28] sm:$0xff] %v844_v9   ;;  %v1003_v10 = vpop.f32.mrb[10].mxu1 }
 0x369   :  { %v618_v11 = vpop.f32.mrb[11].mxu1 }
 0x36a   :  { %v849_v12 = vpack.c.bf16 %v1003_v10, %v618_v11 }
 0x36c   :  { %868 = vst [vmem:[#allocation12 + $0x30] sm:$0xff] %v849_v12   ;;  %v1006_v13 = vpop.f32.mrb[12].mxu1 }
 0x36d   :  { %v628_v14 = vpop.f32.mrb[13].mxu1 }
 0x36e   :  { %v854_v15 = vpack.c.bf16 %v1006_v13, %v628_v14 }
 0x370   :  { %869 = vst [vmem:[#allocation12 + $0x38] sm:$0xff] %v854_v15  }
 0x371   :  { %1192 = shalt.err (!%p1189_p2)
}
 0x372   :  { %s1193_s20 = scalar_lea.hbm %s1366_s7, 1024 }
 0x373   :  { %p1194_p3 = scmp.ne.s32.totalorder %s1366_s7, %s1193_s20  ;;  %p1197_p4 = scmp.lt.u32.totalorder %s1193_s20, %s1366_s7 }
 0x375   :  { %p1199_p5 = pnand %p1197_p4, %p1194_p3 }
 0x377   :  { %1202 = shalt.err (!%p1199_p5)
}
 0x378   :  { %728 = dma.vmem_to_hbm [thread:$0]  %s723_s5, 1024, %s1366_s7, [#allocation5], %s1214_s24, %s1214_s24, %s1215_s25  }
 0x379   :  { %1209 = dma.done.wait [#allocation5], 1024  }
 0x37a   :  { %1210 = vsyncadd [#allocation5], 4294966272 }
 0x37b   :  { %732 = vsyncpa [#allocation4], 1 }
 0x37c   :  { %733 = vsyncpa [#allocation7], 1 }
 0x37d   :  { %734 = vsyncpa [#allocation10], 1 }
 0x37e   :  { %735 = vsyncpa [#allocation5], 1 }

</bundles_post_ra>
